<compile_context>
chip_gen: v5e
topology: v5e:2x2
jax: 0.10.0
libtpu: 0.0.40
codegen_flags: <defaults>
</compile_context>

<pallas_src>
import math
from functools import partial

import jax
import jax.numpy as jnp
from jax.experimental import pallas as pl
from jax.experimental.pallas import tpu as pltpu


# ----------------------------------------------------------------------------------------
# Shared activation (same formula used inside kernels and in the pure-JAX reference path).
# ----------------------------------------------------------------------------------------
def _apply_act(y, act):
    if act == "gelu":  # tanh-approx GELU (ACT2FN['gelu_new'-style]); exp/tanh are EUP ops
        c = math.sqrt(2.0 / math.pi)
        return 0.5 * y * (1.0 + jnp.tanh(c * (y + 0.044715 * y * y * y)))
    if act == "quick_gelu":  # CLIP: x * sigmoid(1.702 x), written with exp only
        return y * (1.0 / (1.0 + jnp.exp(-1.702 * y)))
    return y


def _pick_tile(dim, candidates=(512, 256, 128)):
    for t in candidates:
        if dim >= t and dim % t == 0:
            return t
    return dim  # full extent (exempt from the (8,128) divisibility rule)


# ----------------------------------------------------------------------------------------
# Pallas kernels
# ----------------------------------------------------------------------------------------
def _linear_kernel(x_ref, w_ref, b_ref, o_ref, *, act):
    # x_ref: (TM, K); w_ref: (TN, K) in PyTorch (out,in) layout; b_ref: (1, TN)
    # Contract W's second axis -> straight MXU weight push, no transposed VMEM copy.
    y = jax.lax.dot_general(
        x_ref[...], w_ref[...],
        dimension_numbers=(((1,), (1,)), ((), ())),
        preferred_element_type=jnp.float32)
    y = y + b_ref[...]
    y = _apply_act(y, act)
    o_ref[...] = y.astype(o_ref.dtype)


def _layernorm_kernel(x_ref, g_ref, b_ref, o_ref, *, eps):
    x = x_ref[...].astype(jnp.float32)
    mean = jnp.mean(x, axis=-1, keepdims=True)
    cen = x - mean
    var = jnp.mean(cen * cen, axis=-1, keepdims=True)
    y = cen * jax.lax.rsqrt(var + eps) * g_ref[...] + b_ref[...]
    o_ref[...] = y.astype(o_ref.dtype)


def _attention_kernel(*refs, scale, with_mask):
    if with_mask:
        q_ref, k_ref, v_ref, m_ref, o_ref = refs
    else:
        q_ref, k_ref, v_ref, o_ref = refs
        m_ref = None
    q = q_ref[...].astype(jnp.float32)          # (Tq, D)
    k = k_ref[...].astype(jnp.float32)          # (Tk, D)
    v = v_ref[...].astype(jnp.float32)          # (Tk, D)
    s = jax.lax.dot_general(                    # q @ k^T without transposing k
        q, k, dimension_numbers=(((1,), (1,)), ((), ())),
        preferred_element_type=jnp.float32) * scale
    if m_ref is not None:
        s = s + m_ref[...].astype(jnp.float32)
    s = s - jnp.max(s, axis=-1, keepdims=True)
    p = jnp.exp(s)
    p = p / jnp.sum(p, axis=-1, keepdims=True)
    o = jnp.dot(p, v, preferred_element_type=jnp.float32)
    o_ref[...] = o.astype(o_ref.dtype)


# ----------------------------------------------------------------------------------------
# Pallas wrappers (with pure-JAX fallback used as the numerical reference)
# ----------------------------------------------------------------------------------------
def linear(x, w, b, act="none", use_pallas=True):
    """x: (..., K); w: (N, K) PyTorch layout; b: (N,) -> (..., N) = x @ w.T + b (+act)."""
    if not use_pallas:
        y = jnp.einsum("...k,nk->...n", x, w, precision=jax.lax.Precision.HIGHEST)
        return _apply_act(y + b, act).astype(x.dtype)

    *lead, K = x.shape
    M = math.prod(lead) if lead else 1
    N = w.shape[0]
    x2 = x.reshape(M, K)
    TM = _pick_tile(M, (256, 128))
    TN = _pick_tile(N, (512, 256, 128))
    itemsize = jnp.dtype(x.dtype).itemsize
    out = pl.pallas_call(
        partial(_linear_kernel, act=act),
        out_shape=jax.ShapeDtypeStruct((M, N), x.dtype),
        grid=(M // TM, N // TN),
        in_specs=[
            pl.BlockSpec((TM, K), lambda i, j: (i, 0)),
            pl.BlockSpec((TN, K), lambda i, j: (j, 0)),   # W tiled over out-features
            pl.BlockSpec((1, TN), lambda i, j: (0, j)),
        ],
        out_specs=pl.BlockSpec((TM, TN), lambda i, j: (i, j)),
        compiler_params=pltpu.CompilerParams(
            dimension_semantics=("parallel", "parallel")),
        cost_estimate=pl.CostEstimate(
            flops=2 * M * N * K,
            transcendentals=(M * N if act != "none" else 0),
            bytes_accessed=(M * K + N * K + N + M * N) * itemsize),
    )(x2, w, b.reshape(1, N))
    return out.reshape(*lead, N)


def layernorm(x, g, b, eps, use_pallas=True):
    if not use_pallas:
        xf = x.astype(jnp.float32)
        mean = jnp.mean(xf, axis=-1, keepdims=True)
        cen = xf - mean
        var = jnp.mean(cen * cen, axis=-1, keepdims=True)
        return (cen * jax.lax.rsqrt(var + eps) * g + b).astype(x.dtype)

    *lead, H = x.shape
    M = math.prod(lead) if lead else 1
    x2 = x.reshape(M, H)
    TM = _pick_tile(M, (512, 256, 128))
    out = pl.pallas_call(
        partial(_layernorm_kernel, eps=eps),
        out_shape=jax.ShapeDtypeStruct((M, H), x.dtype),
        grid=(M // TM,),
        in_specs=[
            pl.BlockSpec((TM, H), lambda i: (i, 0)),
            pl.BlockSpec((1, H), lambda i: (0, 0)),
            pl.BlockSpec((1, H), lambda i: (0, 0)),
        ],
        out_specs=pl.BlockSpec((TM, H), lambda i: (i, 0)),
        compiler_params=pltpu.CompilerParams(dimension_semantics=("parallel",)),
    )(x2, g.reshape(1, H), b.reshape(1, H))
    return out.reshape(*lead, H)


def attention(q, k, v, scale, mask=None, use_pallas=True):
    """q: (BH, Tq, D), k/v: (BH, Tk, D), mask: (BH, Tq, Tk) or None -> (BH, Tq, D)."""
    if not use_pallas:
        s = jnp.einsum("bqd,bkd->bqk", q, k, precision=jax.lax.Precision.HIGHEST) * scale
        if mask is not None:
            s = s + mask
        s = s - jnp.max(s, axis=-1, keepdims=True)
        p = jnp.exp(s)
        p = p / jnp.sum(p, axis=-1, keepdims=True)
        return jnp.einsum("bqk,bkd->bqd", p, v,
                          precision=jax.lax.Precision.HIGHEST).astype(q.dtype)

    BH, Tq, D = q.shape
    Tk = k.shape[1]
    with_mask = mask is not None
    in_specs = [
        pl.BlockSpec((pl.Squeezed(), Tq, D), lambda b: (b, 0, 0)),
        pl.BlockSpec((pl.Squeezed(), Tk, D), lambda b: (b, 0, 0)),
        pl.BlockSpec((pl.Squeezed(), Tk, D), lambda b: (b, 0, 0)),
    ]
    args = [q, k, v]
    if with_mask:
        in_specs.append(pl.BlockSpec((pl.Squeezed(), Tq, Tk), lambda b: (b, 0, 0)))
        args.append(mask)
    itemsize = jnp.dtype(q.dtype).itemsize
    return pl.pallas_call(
        partial(_attention_kernel, scale=float(scale), with_mask=with_mask),
        out_shape=jax.ShapeDtypeStruct((BH, Tq, D), q.dtype),
        grid=(BH,),
        in_specs=in_specs,
        out_specs=pl.BlockSpec((pl.Squeezed(), Tq, D), lambda b: (b, 0, 0)),
        compiler_params=pltpu.CompilerParams(dimension_semantics=("parallel",)),
        cost_estimate=pl.CostEstimate(
            flops=4 * BH * Tq * Tk * D,
            transcendentals=BH * Tq * Tk,
            bytes_accessed=BH * (2 * Tq * D + 2 * Tk * D
                                 + (Tq * Tk if with_mask else 0)) * itemsize),
    )(*args)


# ----------------------------------------------------------------------------------------
# Model blocks (eval mode: dropout = identity)
# ----------------------------------------------------------------------------------------
def _shape_heads(x, nh):
    B, S, E = x.shape
    return x.reshape(B, S, nh, E // nh).transpose(0, 2, 1, 3)   # (B, nh, S, d)


def clip_attention_fwd(p, cfg, hidden, textual_kv=None, use_pallas=True, kv_only=False):
    B, S, E = hidden.shape
    nh = cfg["num_attention_heads"]
    d = E // nh
    scale = d ** -0.5
    k = _shape_heads(linear(hidden, p["k_proj"]["w"], p["k_proj"]["b"], use_pallas=use_pallas), nh)
    v = _shape_heads(linear(hidden, p["v_proj"]["w"], p["v_proj"]["b"], use_pallas=use_pallas), nh)
    if textual_kv is not None:
        k = jnp.concatenate([p["textual_kv_weight"] * textual_kv[0], k], axis=2)
        v = jnp.concatenate([p["textual_kv_weight"] * textual_kv[1], v], axis=2)
    if kv_only:
        # The Bert layer discards this CLIPAttention's output and only uses its k/v.
        return None, None, k, v
    q = linear(hidden, p["q_proj"]["w"], p["q_proj"]["b"], use_pallas=use_pallas) * scale
    q = _shape_heads(q, nh)
    src = k.shape[2]
    ctx = attention(q.reshape(B * nh, S, d), k.reshape(B * nh, src, d),
                    v.reshape(B * nh, src, d), scale=1.0, use_pallas=use_pallas)  # q pre-scaled
    ctx = ctx.reshape(B, nh, S, d).transpose(0, 2, 1, 3).reshape(B, S, E)
    out = linear(ctx, p["out_proj"]["w"], p["out_proj"]["b"], use_pallas=use_pallas)
    # k/v kept 4-D (B, nh, src, d) -- the reference code's 3-D/4-D torch.cat is a latent
    # shape bug; this is the intended semantics.
    return out, None, k, v


def clip_layer_fwd(p, cfg, hidden, textual_kv=None, use_pallas=True):
    residual = hidden
    h = layernorm(hidden, p["ln1"]["g"], p["ln1"]["b"], 1e-5, use_pallas)  # nn.LayerNorm default eps
    attn_out, _, _, _ = clip_attention_fwd(p["attn"], cfg, h, textual_kv, use_pallas)
    h = residual + attn_out
    residual = h
    m = layernorm(h, p["ln2"]["g"], p["ln2"]["b"], 1e-5, use_pallas)
    m = linear(m, p["fc1"]["w"], p["fc1"]["b"], act=cfg["hidden_act"], use_pallas=use_pallas)
    m = linear(m, p["fc2"]["w"], p["fc2"]["b"], use_pallas=use_pallas)
    return residual + m


def bert_self_attention_fwd(p, cfg, hidden, attention_mask, visual_hidden_state,
                            output_qks, use_pallas):
    B, S, H = hidden.shape
    nh = cfg["num_attention_heads"]
    d = H // nh
    q = _shape_heads(linear(hidden, p["query"]["w"], p["query"]["b"], use_pallas=use_pallas), nh)
    k = _shape_heads(linear(hidden, p["key"]["w"], p["key"]["b"], use_pallas=use_pallas), nh)
    v = _shape_heads(linear(hidden, p["value"]["w"], p["value"]["b"], use_pallas=use_pallas), nh)
    _, _, clip_k, clip_v = clip_attention_fwd(p["clip"], cfg, hidden, textual_kv=None,
                                              use_pallas=use_pallas, kv_only=True)
    k = jnp.concatenate([p["visual_kv_weight"] * clip_k, k], axis=2)
    v = jnp.concatenate([p["visual_kv_weight"] * clip_v, v], axis=2)
    qks = (k, v) if output_qks else None
    src = k.shape[2]
    mask = None
    if attention_mask is not None:
        mask = jnp.broadcast_to(attention_mask, (B, nh, S, src)).reshape(B * nh, S, src)
    ctx = attention(q.reshape(B * nh, S, d), k.reshape(B * nh, src, d),
                    v.reshape(B * nh, src, d), scale=1.0 / math.sqrt(d),
                    mask=mask, use_pallas=use_pallas)
    ctx = ctx.reshape(B, nh, S, d).transpose(0, 2, 1, 3).reshape(B, S, H)
    fusion_output = None
    if visual_hidden_state is not None:
        # BertFusion: softmax(ctx @ visual^T) @ visual == the attention kernel with scale 1.
        fusion_output = attention(ctx, visual_hidden_state, visual_hidden_state,
                                  scale=1.0, use_pallas=use_pallas)
    return ctx, fusion_output, qks


def bert_layer_fwd(p, cfg, hidden, attention_mask=None, head_mask=None,
                   visual_hidden_state=None, output_qks=None, use_pallas=True):
    # TODO(synk): head_mask scaling of attention probs is not plumbed into the attention
    # kernel (the test passes head_mask=None, which matches the module's default path).
    del head_mask
    eps = cfg["layer_norm_eps"]
    ctx, fusion_output, qks = bert_self_attention_fwd(
        p["self"], cfg, hidden, attention_mask, visual_hidden_state, output_qks, use_pallas)
    so = p["self_out"]                                          # BertSelfOutput
    attn_out = linear(ctx, so["dense"]["w"], so["dense"]["b"], use_pallas=use_pallas)
    attn_out = layernorm(attn_out + hidden, so["ln"]["g"], so["ln"]["b"], eps, use_pallas)
    it = p["intermediate"]                                      # BertIntermediate
    if fusion_output is None:
        inter = linear(attn_out, it["dense"]["w"], it["dense"]["b"],
                       act=cfg["hidden_act"], use_pallas=use_pallas)   # act fused in-kernel
    else:
        inter = linear(attn_out, it["dense"]["w"], it["dense"]["b"], use_pallas=use_pallas)
        inter = inter + linear(fusion_output, it["fusion_dense"]["w"],
                               it["fusion_dense"]["b"], use_pallas=use_pallas)
        inter = _apply_act(inter, cfg["hidden_act"])  # activation after the fused add
    ot = p["output"]                                            # BertOutput
    out = linear(inter, ot["dense"]["w"], ot["dense"]["b"], use_pallas=use_pallas)
    out = layernorm(out + attn_out, ot["ln"]["g"], ot["ln"]["b"], eps, use_pallas)
    return out, qks


def interation_encoder_fwd(params, vision_embeds, text_embeds, attention_mask=None,
                           *, vcfg, tcfg, use_pallas=True):
    assert vcfg["num_hidden_layers"] == tcfg["num_hidden_layers"]
    vision_h, text_h = vision_embeds, text_embeds
    qks = None
    for idx in range(vcfg["num_hidden_layers"]):
        textual_kv = qks if idx >= 8 else None
        vision_h = clip_layer_fwd(params["vision_layers"][idx], vcfg, vision_h,
                                  textual_kv=textual_kv, use_pallas=use_pallas)
        last_hidden_state = vision_h if idx >= 8 else None
        output_qks = True if idx >= 7 else None
        text_h, qks = bert_layer_fwd(params["text_layers"][idx], tcfg, text_h,
                                     attention_mask=attention_mask,
                                     visual_hidden_state=last_hidden_state,
                                     output_qks=output_qks, use_pallas=use_pallas)
    # TODO(synk): output_attentions / output_hidden_states tuples are not materialized
    # (the Pallas attention kernel never writes the prob matrix back to HBM).
    return (text_h,)   # matches the module's not-return_dict output


def _cross_modal_once(params, text_embeds, vision_embeds, *, vcfg, tcfg, use_pallas):
    # Exercises the idx>=7/8 paths (fusion + qks output + textual_kv injection) directly.
    t_out, qks = bert_layer_fwd(params["text_layers"][0], tcfg, text_embeds,
                                visual_hidden_state=vision_embeds, output_qks=True,
                                use_pallas=use_pallas)
    v_out = clip_layer_fwd(params["vision_layers"][0], vcfg, vision_embeds,
                           textual_kv=qks, use_pallas=use_pallas)
    return t_out, v_out


# ----------------------------------------------------------------------------------------
# Deterministic parameter init (PyTorch shapes: Linear weight is (out_features, in_features))
# ----------------------------------------------------------------------------------------
def init_linear(key, out_f, in_f):
    kw, kb = jax.random.split(key)
    s = 1.0 / math.sqrt(in_f)
    return {"w": jax.random.normal(kw, (out_f, in_f), jnp.float32) * s,
            "b": jax.random.normal(kb, (out_f,), jnp.float32) * 0.02}


def init_layernorm(H):
    return {"g": jnp.ones((H,), jnp.float32), "b": jnp.zeros((H,), jnp.float32)}


def init_clip_attention(key, H):
    ks = jax.random.split(key, 4)
    return {"q_proj": init_linear(ks[0], H, H), "k_proj": init_linear(ks[1], H, H),
            "v_proj": init_linear(ks[2], H, H), "out_proj": init_linear(ks[3], H, H),
            "textual_kv_weight": jnp.array(1.0, jnp.float32)}


def init_clip_layer(key, H, I):
    k1, k2, k3 = jax.random.split(key, 3)
    return {"ln1": init_layernorm(H), "attn": init_clip_attention(k1, H),
            "ln2": init_layernorm(H),
            "fc1": init_linear(k2, I, H), "fc2": init_linear(k3, H, I)}


def init_bert_layer(key, H, I):
    ks = jax.random.split(key, 8)
    return {
        "self": {"query": init_linear(ks[0], H, H), "key": init_linear(ks[1], H, H),
                 "value": init_linear(ks[2], H, H), "clip": init_clip_attention(ks[3], H),
                 "visual_kv_weight": jnp.array(1.0, jnp.float32)},
        "self_out": {"dense": init_linear(ks[4], H, H), "ln": init_layernorm(H)},
        "intermediate": {"dense": init_linear(ks[5], I, H),
                         "fusion_dense": init_linear(ks[6], I, H)},
        "output": {"dense": init_linear(ks[7], H, I), "ln": init_layernorm(H)},
    }


# ----------------------------------------------------------------------------------------
if __name__ == "__main__":
    # Small, module-consistent shapes: batch=2, seq=8 (text & vision), hidden=32,
    # heads=4, intermediate=64, num_hidden_layers=2.
    B, S_TXT, S_VIS, H, NH, I, L = 2, 8, 8, 32, 4, 64, 2
    vcfg = dict(hidden_size=H, num_attention_heads=NH, intermediate_size=I,
                num_hidden_layers=L, hidden_act="quick_gelu", layer_norm_eps=1e-5)
    tcfg = dict(hidden_size=H, num_attention_heads=NH, intermediate_size=I,
                num_hidden_layers=L, hidden_act="gelu", layer_norm_eps=1e-12)

    key = jax.random.PRNGKey(0)
    k_v, k_t, k_ve, k_te = jax.random.split(key, 4)
    params = {
        "vision_layers": [init_clip_layer(k, H, I) for k in jax.random.split(k_v, L)],
        "text_layers": [init_bert_layer(k, H, I) for k in jax.random.split(k_t, L)],
    }
    vision_embeds = jax.random.normal(k_ve, (B, S_VIS, H), jnp.float32)
    text_embeds = jax.random.normal(k_te, (B, S_TXT, H), jnp.float32)

    # --- full encoder (Pallas) vs pure-JAX reference ---
    fwd_pallas = jax.jit(partial(interation_encoder_fwd, vcfg=vcfg, tcfg=tcfg, use_pallas=True))
    (text_out,) = fwd_pallas(params, vision_embeds, text_embeds)
    text_out = jax.block_until_ready(text_out)
    (text_ref,) = interation_encoder_fwd(params, vision_embeds, text_embeds,
                                         vcfg=vcfg, tcfg=tcfg, use_pallas=False)
    assert text_out.shape == (B, S_TXT, H)
    assert jnp.allclose(text_out, text_ref, atol=2e-3, rtol=2e-3), "encoder mismatch vs reference"

    # --- cross-modal paths (fusion / qks / textual_kv, i.e. the idx>=7/8 behaviour) ---
    cross_pallas = jax.jit(partial(_cross_modal_once, vcfg=vcfg, tcfg=tcfg, use_pallas=True))
    t_p, v_p = cross_pallas(params, text_embeds, vision_embeds)
    t_p = jax.block_until_ready(t_p)
    v_p = jax.block_until_ready(v_p)
    t_r, v_r = _cross_modal_once(params, text_embeds, vision_embeds,
                                 vcfg=vcfg, tcfg=tcfg, use_pallas=False)
    assert jnp.allclose(t_p, t_r, atol=2e-3, rtol=2e-3), "cross-modal text mismatch"
    assert jnp.allclose(v_p, v_r, atol=2e-3, rtol=2e-3), "cross-modal vision mismatch"

    print("KERNEL_OK")
</pallas_src>

<mosaic_0001>
module attributes {stable_mosaic.version = 11 : i64} {
  func.func @_linear_kernel(%arg0: i32, %arg1: i32, %arg2: memref<16x32xf32, #tpu.memory_space<vmem>>, %arg3: memref<32x32xf32, #tpu.memory_space<vmem>>, %arg4: memref<1x32xf32, #tpu.memory_space<vmem>>, %arg5: memref<16x32xf32, #tpu.memory_space<vmem>>) attributes {dimension_semantics = [#tpu.dimension_semantics<parallel>, #tpu.dimension_semantics<parallel>], iteration_bounds = array<i64: 1, 1>, scalar_prefetch = 0 : i64, scratch_operands = 0 : i64, tpu.core_type = #tpu.core_type<tc>, window_params = [{transform_indices = @transform_0, window_bounds = array<i64: 16, 32>}, {transform_indices = @transform_1, window_bounds = array<i64: 32, 32>}, {transform_indices = @transform_2, window_bounds = array<i64: 1, 32>}, {transform_indices = @transform_3, window_bounds = array<i64: 16, 32>}]} {
    %c0 = arith.constant 0 : index
    %c0_0 = arith.constant 0 : index
    %0 = vector.load %arg2[%c0, %c0_0] : memref<16x32xf32, #tpu.memory_space<vmem>>, vector<16x32xf32>
    %c0_1 = arith.constant 0 : index
    %c0_2 = arith.constant 0 : index
    %1 = vector.load %arg3[%c0_1, %c0_2] : memref<32x32xf32, #tpu.memory_space<vmem>>, vector<32x32xf32>
    %cst = arith.constant dense<0.000000e+00> : vector<16x32xf32>
    %2 = tpu.matmul %0, %1, %cst {dimension_numbers = #tpu.dot_dimension_numbers<[1], [1], [0], [0], [0, 0, 1, 0], [], []>} : vector<16x32xf32>, vector<32x32xf32>, vector<16x32xf32> -> vector<16x32xf32>
    %c0_3 = arith.constant 0 : index
    %c0_4 = arith.constant 0 : index
    %3 = vector.load %arg4[%c0_3, %c0_4] : memref<1x32xf32, #tpu.memory_space<vmem>>, vector<1x32xf32>
    %4 = vector.broadcast %3 : vector<1x32xf32> to vector<16x32xf32>
    %5 = arith.addf %2, %4 : vector<16x32xf32>
    %c0_5 = arith.constant 0 : index
    %c0_6 = arith.constant 0 : index
    %6 = vector.load %arg5[%c0_5, %c0_6] : memref<16x32xf32, #tpu.memory_space<vmem>>, vector<16x32xf32>
    tpu.vector_store %arg5[%c0_5, %c0_6], %5 {strides = array<i32>} : memref<16x32xf32, #tpu.memory_space<vmem>>, vector<16x32xf32>,
    return
  }
  func.func @transform_0(%arg0: i32, %arg1: i32) -> (i32, i32) {
    %c0_i32 = arith.constant 0 : i32
    %c0_i32_0 = arith.constant 0 : i32
    return %arg0, %c0_i32 : i32, i32
  }
  func.func @transform_1(%arg0: i32, %arg1: i32) -> (i32, i32) {
    %c0_i32 = arith.constant 0 : i32
    %c0_i32_0 = arith.constant 0 : i32
    return %arg1, %c0_i32 : i32, i32
  }
  func.func @transform_2(%arg0: i32, %arg1: i32) -> (i32, i32) {
    %c0_i32 = arith.constant 0 : i32
    %c0_i32_0 = arith.constant 0 : i32
    return %c0_i32, %arg1 : i32, i32
  }
  func.func @transform_3(%arg0: i32, %arg1: i32) -> (i32, i32) {
    %c0_i32 = arith.constant 0 : i32
    return %arg0, %arg1 : i32, i32
  }
}

module attributes {stable_mosaic.version = 11 : i64} {
  func.func @_linear_kernel(%arg0: i32, %arg1: i32, %arg2: memref<16x32xf32, #tpu.memory_space<vmem>>, %arg3: memref<32x32xf32, #tpu.memory_space<vmem>>, %arg4: memref<1x32xf32, #tpu.memory_space<vmem>>, %arg5: memref<16x32xf32, #tpu.memory_space<vmem>>) attributes {dimension_semantics = [#tpu.dimension_semantics<parallel>, #tpu.dimension_semantics<parallel>], iteration_bounds = array<i64: 1, 1>, scalar_prefetch = 0 : i64, scratch_operands = 0 : i64, tpu.core_type = #tpu.core_type<tc>, window_params = [{transform_indices = @transform_0, window_bounds = array<i64: 16, 32>}, {transform_indices = @transform_1, window_bounds = array<i64: 32, 32>}, {transform_indices = @transform_2, window_bounds = array<i64: 1, 32>}, {transform_indices = @transform_3, window_bounds = array<i64: 16, 32>}]} {
    %c0 = arith.constant 0 : index
    %c0_0 = arith.constant 0 : index
    %0 = vector.load %arg2[%c0, %c0_0] : memref<16x32xf32, #tpu.memory_space<vmem>>, vector<16x32xf32>
    %c0_1 = arith.constant 0 : index
    %c0_2 = arith.constant 0 : index
    %1 = vector.load %arg3[%c0_1, %c0_2] : memref<32x32xf32, #tpu.memory_space<vmem>>, vector<32x32xf32>
    %cst = arith.constant dense<0.000000e+00> : vector<16x32xf32>
    %2 = tpu.matmul %0, %1, %cst {dimension_numbers = #tpu.dot_dimension_numbers<[1], [1], [0], [0], [0, 0, 1, 0], [], []>} : vector<16x32xf32>, vector<32x32xf32>, vector<16x32xf32> -> vector<16x32xf32>
    %c0_3 = arith.constant 0 : index
    %c0_4 = arith.constant 0 : index
    %3 = vector.load %arg4[%c0_3, %c0_4] : memref<1x32xf32, #tpu.memory_space<vmem>>, vector<1x32xf32>
    %4 = vector.broadcast %3 : vector<1x32xf32> to vector<16x32xf32>
    %5 = arith.addf %2, %4 : vector<16x32xf32>
    %c0_5 = arith.constant 0 : index
    %c0_6 = arith.constant 0 : index
    %6 = vector.load %arg5[%c0_5, %c0_6] : memref<16x32xf32, #tpu.memory_space<vmem>>, vector<16x32xf32>
    tpu.vector_store %arg5[%c0_5, %c0_6], %5 {strides = array<i32>} : memref<16x32xf32, #tpu.memory_space<vmem>>, vector<16x32xf32>,
    return
  }
  func.func @transform_0(%arg0: i32, %arg1: i32) -> (i32, i32) {
    %c0_i32 = arith.constant 0 : i32
    %c0_i32_0 = arith.constant 0 : i32
    return %arg0, %c0_i32 : i32, i32
  }
  func.func @transform_1(%arg0: i32, %arg1: i32) -> (i32, i32) {
    %c0_i32 = arith.constant 0 : i32
    %c0_i32_0 = arith.constant 0 : i32
    return %arg1, %c0_i32 : i32, i32
  }
  func.func @transform_2(%arg0: i32, %arg1: i32) -> (i32, i32) {
    %c0_i32 = arith.constant 0 : i32
    %c0_i32_0 = arith.constant 0 : i32
    return %c0_i32, %arg1 : i32, i32
  }
  func.func @transform_3(%arg0: i32, %arg1: i32) -> (i32, i32) {
    %c0_i32 = arith.constant 0 : i32
    return %arg0, %arg1 : i32, i32
  }
}

module attributes {stable_mosaic.version = 11 : i64} {
  func.func @_attention_kernel(%arg0: i32, %arg1: memref<1x8x8xf32, #tpu.memory_space<vmem>>, %arg2: memref<1x16x8xf32, #tpu.memory_space<vmem>>, %arg3: memref<1x16x8xf32, #tpu.memory_space<vmem>>, %arg4: memref<1x8x8xf32, #tpu.memory_space<vmem>>) attributes {dimension_semantics = [#tpu.dimension_semantics<parallel>], iteration_bounds = array<i64: 8>, scalar_prefetch = 0 : i64, scratch_operands = 0 : i64, tpu.core_type = #tpu.core_type<tc>, window_params = [{transform_indices = @transform_0, window_bounds = array<i64: 1, 8, 8>}, {transform_indices = @transform_1, window_bounds = array<i64: 1, 16, 8>}, {transform_indices = @transform_2, window_bounds = array<i64: 1, 16, 8>}, {transform_indices = @transform_3, window_bounds = array<i64: 1, 8, 8>}]} {
    %c0 = arith.constant 0 : index
    %c0_0 = arith.constant 0 : index
    %c0_1 = arith.constant 0 : index
    %0 = vector.load %arg1[%c0, %c0_0, %c0_1] : memref<1x8x8xf32, #tpu.memory_space<vmem>>, vector<1x8x8xf32>
    %1 = vector.shape_cast %0 : vector<1x8x8xf32> to vector<8x8xf32>
    %c0_2 = arith.constant 0 : index
    %c0_3 = arith.constant 0 : index
    %c0_4 = arith.constant 0 : index
    %2 = vector.load %arg2[%c0_2, %c0_3, %c0_4] : memref<1x16x8xf32, #tpu.memory_space<vmem>>, vector<1x16x8xf32>
    %3 = vector.shape_cast %2 : vector<1x16x8xf32> to vector<16x8xf32>
    %c0_5 = arith.constant 0 : index
    %c0_6 = arith.constant 0 : index
    %c0_7 = arith.constant 0 : index
    %4 = vector.load %arg3[%c0_5, %c0_6, %c0_7] : memref<1x16x8xf32, #tpu.memory_space<vmem>>, vector<1x16x8xf32>
    %5 = vector.shape_cast %4 : vector<1x16x8xf32> to vector<16x8xf32>
    %cst = arith.constant dense<0.000000e+00> : vector<8x16xf32>
    %6 = tpu.matmul %1, %3, %cst {dimension_numbers = #tpu.dot_dimension_numbers<[1], [1], [0], [0], [0, 0, 1, 0], [], []>} : vector<8x8xf32>, vector<16x8xf32>, vector<8x16xf32> -> vector<8x16xf32>
    %cst_8 = arith.constant 0.353553385 : f32
    %7 = vector.broadcast %cst_8 : f32 to vector<8x16xf32>
    %8 = arith.mulf %6, %7 : vector<8x16xf32>
    %cst_9 = arith.constant dense<0xFF800000> : vector<8xf32>
    %9 = vector.multi_reduction <maximumf>, %8, %cst_9 [1] : vector<8x16xf32> to vector<8xf32>
    %10 = vector.shape_cast %9 : vector<8xf32> to vector<8x1xf32>
    %11 = vector.broadcast %10 : vector<8x1xf32> to vector<8x16xf32>
    %12 = arith.subf %8, %11 : vector<8x16xf32>
    %13 = math.exp %12 : vector<8x16xf32>
    %cst_10 = arith.constant dense<0.000000e+00> : vector<8xf32>
    %14 = vector.multi_reduction <add>, %13, %cst_10 [1] : vector<8x16xf32> to vector<8xf32>
    %15 = vector.shape_cast %14 : vector<8xf32> to vector<8x1xf32>
    %16 = vector.broadcast %15 : vector<8x1xf32> to vector<8x16xf32>
    %17 = arith.divf %13, %16 : vector<8x16xf32>
    %cst_11 = arith.constant dense<0.000000e+00> : vector<8x8xf32>
    %18 = tpu.matmul %17, %5, %cst_11 {dimension_numbers = #tpu.dot_dimension_numbers<[1], [0], [0], [1], [0, 0, 1, 1], [], []>} : vector<8x16xf32>, vector<16x8xf32>, vector<8x8xf32> -> vector<8x8xf32>
    %c0_12 = arith.constant 0 : index
    %c0_13 = arith.constant 0 : index
    %c0_14 = arith.constant 0 : index
    %19 = vector.load %arg4[%c0_12, %c0_13, %c0_14] : memref<1x8x8xf32, #tpu.memory_space<vmem>>, vector<1x8x8xf32>
    %20 = vector.shape_cast %19 : vector<1x8x8xf32> to vector<8x8xf32>
    %21 = vector.shape_cast %18 : vector<8x8xf32> to vector<1x8x8xf32>
    tpu.vector_store %arg4[%c0_12, %c0_13, %c0_14], %21 {strides = array<i32>} : memref<1x8x8xf32, #tpu.memory_space<vmem>>, vector<1x8x8xf32>,
    return
  }
  func.func @transform_0(%arg0: i32) -> (i32, i32, i32) {
    %c0_i32 = arith.constant 0 : i32
    %c0_i32_0 = arith.constant 0 : i32
    %c0_i32_1 = arith.constant 0 : i32
    return %arg0, %c0_i32, %c0_i32_0 : i32, i32, i32
  }
  func.func @transform_1(%arg0: i32) -> (i32, i32, i32) {
    %c0_i32 = arith.constant 0 : i32
    %c0_i32_0 = arith.constant 0 : i32
    %c0_i32_1 = arith.constant 0 : i32
    return %arg0, %c0_i32, %c0_i32_0 : i32, i32, i32
  }
  func.func @transform_2(%arg0: i32) -> (i32, i32, i32) {
    %c0_i32 = arith.constant 0 : i32
    %c0_i32_0 = arith.constant 0 : i32
    %c0_i32_1 = arith.constant 0 : i32
    return %arg0, %c0_i32, %c0_i32_0 : i32, i32, i32
  }
  func.func @transform_3(%arg0: i32) -> (i32, i32, i32) {
    %c0_i32 = arith.constant 0 : i32
    %c0_i32_0 = arith.constant 0 : i32
    %c0_i32_1 = arith.constant 0 : i32
    return %arg0, %c0_i32, %c0_i32_0 : i32, i32, i32
  }
}

module attributes {stable_mosaic.version = 11 : i64} {
  func.func @_layernorm_kernel(%arg0: i32, %arg1: memref<16x32xf32, #tpu.memory_space<vmem>>, %arg2: memref<1x32xf32, #tpu.memory_space<vmem>>, %arg3: memref<1x32xf32, #tpu.memory_space<vmem>>, %arg4: memref<16x32xf32, #tpu.memory_space<vmem>>) attributes {dimension_semantics = [#tpu.dimension_semantics<parallel>], iteration_bounds = array<i64: 1>, scalar_prefetch = 0 : i64, scratch_operands = 0 : i64, tpu.core_type = #tpu.core_type<tc>, window_params = [{transform_indices = @transform_0, window_bounds = array<i64: 16, 32>}, {pipeline_mode = #tpu.pipeline_mode<synchronous>, transform_indices = @transform_1, window_bounds = array<i64: 1, 32>}, {pipeline_mode = #tpu.pipeline_mode<synchronous>, transform_indices = @transform_2, window_bounds = array<i64: 1, 32>}, {transform_indices = @transform_3, window_bounds = array<i64: 16, 32>}]} {
    %c0 = arith.constant 0 : index
    %c0_0 = arith.constant 0 : index
    %0 = vector.load %arg1[%c0, %c0_0] : memref<16x32xf32, #tpu.memory_space<vmem>>, vector<16x32xf32>
    %cst = arith.constant dense<0.000000e+00> : vector<16xf32>
    %1 = vector.multi_reduction <add>, %0, %cst [1] : vector<16x32xf32> to vector<16xf32>
    %2 = vector.shape_cast %1 : vector<16xf32> to vector<16x1xf32>
    %cst_1 = arith.constant 3.200000e+01 : f32
    %3 = vector.broadcast %cst_1 : f32 to vector<16x1xf32>
    %4 = arith.divf %2, %3 : vector<16x1xf32>
    %5 = vector.broadcast %4 : vector<16x1xf32> to vector<16x32xf32>
    %6 = arith.subf %0, %5 : vector<16x32xf32>
    %7 = arith.mulf %6, %6 : vector<16x32xf32>
    %cst_2 = arith.constant dense<0.000000e+00> : vector<16xf32>
    %8 = vector.multi_reduction <add>, %7, %cst_2 [1] : vector<16x32xf32> to vector<16xf32>
    %9 = vector.shape_cast %8 : vector<16xf32> to vector<16x1xf32>
    %cst_3 = arith.constant 3.200000e+01 : f32
    %10 = vector.broadcast %cst_3 : f32 to vector<16x1xf32>
    %11 = arith.divf %9, %10 : vector<16x1xf32>
    %cst_4 = arith.constant 9.99999996E-13 : f32
    %12 = vector.broadcast %cst_4 : f32 to vector<16x1xf32>
    %13 = arith.addf %11, %12 : vector<16x1xf32>
    %14 = math.rsqrt %13 : vector<16x1xf32>
    %15 = vector.broadcast %14 : vector<16x1xf32> to vector<16x32xf32>
    %16 = arith.mulf %6, %15 : vector<16x32xf32>
    %c0_5 = arith.constant 0 : index
    %c0_6 = arith.constant 0 : index
    %17 = vector.load %arg2[%c0_5, %c0_6] : memref<1x32xf32, #tpu.memory_space<vmem>>, vector<1x32xf32>
    %18 = vector.broadcast %17 : vector<1x32xf32> to vector<16x32xf32>
    %19 = arith.mulf %16, %18 : vector<16x32xf32>
    %c0_7 = arith.constant 0 : index
    %c0_8 = arith.constant 0 : index
    %20 = vector.load %arg3[%c0_7, %c0_8] : memref<1x32xf32, #tpu.memory_space<vmem>>, vector<1x32xf32>
    %21 = vector.broadcast %20 : vector<1x32xf32> to vector<16x32xf32>
    %22 = arith.addf %19, %21 : vector<16x32xf32>
    %c0_9 = arith.constant 0 : index
    %c0_10 = arith.constant 0 : index
    %23 = vector.load %arg4[%c0_9, %c0_10] : memref<16x32xf32, #tpu.memory_space<vmem>>, vector<16x32xf32>
    tpu.vector_store %arg4[%c0_9, %c0_10], %22 {strides = array<i32>} : memref<16x32xf32, #tpu.memory_space<vmem>>, vector<16x32xf32>,
    return
  }
  func.func @transform_0(%arg0: i32) -> (i32, i32) {
    %c0_i32 = arith.constant 0 : i32
    %c0_i32_0 = arith.constant 0 : i32
    return %arg0, %c0_i32 : i32, i32
  }
  func.func @transform_1(%arg0: i32) -> (i32, i32) {
    %c0_i32 = arith.constant 0 : i32
    %c0_i32_0 = arith.constant 0 : i32
    %c0_i32_1 = arith.constant 0 : i32
    return %c0_i32, %c0_i32_0 : i32, i32
  }
  func.func @transform_2(%arg0: i32) -> (i32, i32) {
    %c0_i32 = arith.constant 0 : i32
    %c0_i32_0 = arith.constant 0 : i32
    %c0_i32_1 = arith.constant 0 : i32
    return %c0_i32, %c0_i32_0 : i32, i32
  }
  func.func @transform_3(%arg0: i32) -> (i32, i32) {
    %c0_i32 = arith.constant 0 : i32
    %c0_i32_0 = arith.constant 0 : i32
    return %arg0, %c0_i32 : i32, i32
  }
}

module attributes {stable_mosaic.version = 11 : i64} {
  func.func @_linear_kernel(%arg0: i32, %arg1: i32, %arg2: memref<16x32xf32, #tpu.memory_space<vmem>>, %arg3: memref<64x32xf32, #tpu.memory_space<vmem>>, %arg4: memref<1x64xf32, #tpu.memory_space<vmem>>, %arg5: memref<16x64xf32, #tpu.memory_space<vmem>>) attributes {dimension_semantics = [#tpu.dimension_semantics<parallel>, #tpu.dimension_semantics<parallel>], iteration_bounds = array<i64: 1, 1>, scalar_prefetch = 0 : i64, scratch_operands = 0 : i64, tpu.core_type = #tpu.core_type<tc>, window_params = [{transform_indices = @transform_0, window_bounds = array<i64: 16, 32>}, {transform_indices = @transform_1, window_bounds = array<i64: 64, 32>}, {transform_indices = @transform_2, window_bounds = array<i64: 1, 64>}, {transform_indices = @transform_3, window_bounds = array<i64: 16, 64>}]} {
    %c0 = arith.constant 0 : index
    %c0_0 = arith.constant 0 : index
    %0 = vector.load %arg2[%c0, %c0_0] : memref<16x32xf32, #tpu.memory_space<vmem>>, vector<16x32xf32>
    %c0_1 = arith.constant 0 : index
    %c0_2 = arith.constant 0 : index
    %1 = vector.load %arg3[%c0_1, %c0_2] : memref<64x32xf32, #tpu.memory_space<vmem>>, vector<64x32xf32>
    %cst = arith.constant dense<0.000000e+00> : vector<16x64xf32>
    %2 = tpu.matmul %0, %1, %cst {dimension_numbers = #tpu.dot_dimension_numbers<[1], [1], [0], [0], [0, 0, 1, 0], [], []>} : vector<16x32xf32>, vector<64x32xf32>, vector<16x64xf32> -> vector<16x64xf32>
    %c0_3 = arith.constant 0 : index
    %c0_4 = arith.constant 0 : index
    %3 = vector.load %arg4[%c0_3, %c0_4] : memref<1x64xf32, #tpu.memory_space<vmem>>, vector<1x64xf32>
    %4 = vector.broadcast %3 : vector<1x64xf32> to vector<16x64xf32>
    %5 = arith.addf %2, %4 : vector<16x64xf32>
    %cst_5 = arith.constant 5.000000e-01 : f32
    %6 = vector.broadcast %cst_5 : f32 to vector<16x64xf32>
    %7 = arith.mulf %6, %5 : vector<16x64xf32>
    %cst_6 = arith.constant 4.471500e-02 : f32
    %8 = vector.broadcast %cst_6 : f32 to vector<16x64xf32>
    %9 = arith.mulf %8, %5 : vector<16x64xf32>
    %10 = arith.mulf %9, %5 : vector<16x64xf32>
    %11 = arith.mulf %10, %5 : vector<16x64xf32>
    %12 = arith.addf %5, %11 : vector<16x64xf32>
    %cst_7 = arith.constant 0.797884583 : f32
    %13 = vector.broadcast %cst_7 : f32 to vector<16x64xf32>
    %14 = arith.mulf %13, %12 : vector<16x64xf32>
    %15 = math.tanh %14 : vector<16x64xf32>
    %cst_8 = arith.constant 1.000000e+00 : f32
    %16 = vector.broadcast %cst_8 : f32 to vector<16x64xf32>
    %17 = arith.addf %16, %15 : vector<16x64xf32>
    %18 = arith.mulf %7, %17 : vector<16x64xf32>
    %c0_9 = arith.constant 0 : index
    %c0_10 = arith.constant 0 : index
    %19 = vector.load %arg5[%c0_9, %c0_10] : memref<16x64xf32, #tpu.memory_space<vmem>>, vector<16x64xf32>
    tpu.vector_store %arg5[%c0_9, %c0_10], %18 {strides = array<i32>} : memref<16x64xf32, #tpu.memory_space<vmem>>, vector<16x64xf32>,
    return
  }
  func.func @transform_0(%arg0: i32, %arg1: i32) -> (i32, i32) {
    %c0_i32 = arith.constant 0 : i32
    %c0_i32_0 = arith.constant 0 : i32
    return %arg0, %c0_i32 : i32, i32
  }
  func.func @transform_1(%arg0: i32, %arg1: i32) -> (i32, i32) {
    %c0_i32 = arith.constant 0 : i32
    %c0_i32_0 = arith.constant 0 : i32
    return %arg1, %c0_i32 : i32, i32
  }
  func.func @transform_2(%arg0: i32, %arg1: i32) -> (i32, i32) {
    %c0_i32 = arith.constant 0 : i32
    %c0_i32_0 = arith.constant 0 : i32
    return %c0_i32, %arg1 : i32, i32
  }
  func.func @transform_3(%arg0: i32, %arg1: i32) -> (i32, i32) {
    %c0_i32 = arith.constant 0 : i32
    return %arg0, %arg1 : i32, i32
  }
}

module attributes {stable_mosaic.version = 11 : i64} {
  func.func @_linear_kernel(%arg0: i32, %arg1: i32, %arg2: memref<16x64xf32, #tpu.memory_space<vmem>>, %arg3: memref<32x64xf32, #tpu.memory_space<vmem>>, %arg4: memref<1x32xf32, #tpu.memory_space<vmem>>, %arg5: memref<16x32xf32, #tpu.memory_space<vmem>>) attributes {dimension_semantics = [#tpu.dimension_semantics<parallel>, #tpu.dimension_semantics<parallel>], iteration_bounds = array<i64: 1, 1>, scalar_prefetch = 0 : i64, scratch_operands = 0 : i64, tpu.core_type = #tpu.core_type<tc>, window_params = [{transform_indices = @transform_0, window_bounds = array<i64: 16, 64>}, {transform_indices = @transform_1, window_bounds = array<i64: 32, 64>}, {transform_indices = @transform_2, window_bounds = array<i64: 1, 32>}, {transform_indices = @transform_3, window_bounds = array<i64: 16, 32>}]} {
    %c0 = arith.constant 0 : index
    %c0_0 = arith.constant 0 : index
    %0 = vector.load %arg2[%c0, %c0_0] : memref<16x64xf32, #tpu.memory_space<vmem>>, vector<16x64xf32>
    %c0_1 = arith.constant 0 : index
    %c0_2 = arith.constant 0 : index
    %1 = vector.load %arg3[%c0_1, %c0_2] : memref<32x64xf32, #tpu.memory_space<vmem>>, vector<32x64xf32>
    %cst = arith.constant dense<0.000000e+00> : vector<16x32xf32>
    %2 = tpu.matmul %0, %1, %cst {dimension_numbers = #tpu.dot_dimension_numbers<[1], [1], [0], [0], [0, 0, 1, 0], [], []>} : vector<16x64xf32>, vector<32x64xf32>, vector<16x32xf32> -> vector<16x32xf32>
    %c0_3 = arith.constant 0 : index
    %c0_4 = arith.constant 0 : index
    %3 = vector.load %arg4[%c0_3, %c0_4] : memref<1x32xf32, #tpu.memory_space<vmem>>, vector<1x32xf32>
    %4 = vector.broadcast %3 : vector<1x32xf32> to vector<16x32xf32>
    %5 = arith.addf %2, %4 : vector<16x32xf32>
    %c0_5 = arith.constant 0 : index
    %c0_6 = arith.constant 0 : index
    %6 = vector.load %arg5[%c0_5, %c0_6] : memref<16x32xf32, #tpu.memory_space<vmem>>, vector<16x32xf32>
    tpu.vector_store %arg5[%c0_5, %c0_6], %5 {strides = array<i32>} : memref<16x32xf32, #tpu.memory_space<vmem>>, vector<16x32xf32>,
    return
  }
  func.func @transform_0(%arg0: i32, %arg1: i32) -> (i32, i32) {
    %c0_i32 = arith.constant 0 : i32
    %c0_i32_0 = arith.constant 0 : i32
    return %arg0, %c0_i32 : i32, i32
  }
  func.func @transform_1(%arg0: i32, %arg1: i32) -> (i32, i32) {
    %c0_i32 = arith.constant 0 : i32
    %c0_i32_0 = arith.constant 0 : i32
    return %arg1, %c0_i32 : i32, i32
  }
  func.func @transform_2(%arg0: i32, %arg1: i32) -> (i32, i32) {
    %c0_i32 = arith.constant 0 : i32
    %c0_i32_0 = arith.constant 0 : i32
    return %c0_i32, %arg1 : i32, i32
  }
  func.func @transform_3(%arg0: i32, %arg1: i32) -> (i32, i32) {
    %c0_i32 = arith.constant 0 : i32
    return %arg0, %arg1 : i32, i32
  }
}

module attributes {stable_mosaic.version = 11 : i64} {
  func.func @_layernorm_kernel(%arg0: i32, %arg1: memref<16x32xf32, #tpu.memory_space<vmem>>, %arg2: memref<1x32xf32, #tpu.memory_space<vmem>>, %arg3: memref<1x32xf32, #tpu.memory_space<vmem>>, %arg4: memref<16x32xf32, #tpu.memory_space<vmem>>) attributes {dimension_semantics = [#tpu.dimension_semantics<parallel>], iteration_bounds = array<i64: 1>, scalar_prefetch = 0 : i64, scratch_operands = 0 : i64, tpu.core_type = #tpu.core_type<tc>, window_params = [{transform_indices = @transform_0, window_bounds = array<i64: 16, 32>}, {pipeline_mode = #tpu.pipeline_mode<synchronous>, transform_indices = @transform_1, window_bounds = array<i64: 1, 32>}, {pipeline_mode = #tpu.pipeline_mode<synchronous>, transform_indices = @transform_2, window_bounds = array<i64: 1, 32>}, {transform_indices = @transform_3, window_bounds = array<i64: 16, 32>}]} {
    %c0 = arith.constant 0 : index
    %c0_0 = arith.constant 0 : index
    %0 = vector.load %arg1[%c0, %c0_0] : memref<16x32xf32, #tpu.memory_space<vmem>>, vector<16x32xf32>
    %cst = arith.constant dense<0.000000e+00> : vector<16xf32>
    %1 = vector.multi_reduction <add>, %0, %cst [1] : vector<16x32xf32> to vector<16xf32>
    %2 = vector.shape_cast %1 : vector<16xf32> to vector<16x1xf32>
    %cst_1 = arith.constant 3.200000e+01 : f32
    %3 = vector.broadcast %cst_1 : f32 to vector<16x1xf32>
    %4 = arith.divf %2, %3 : vector<16x1xf32>
    %5 = vector.broadcast %4 : vector<16x1xf32> to vector<16x32xf32>
    %6 = arith.subf %0, %5 : vector<16x32xf32>
    %7 = arith.mulf %6, %6 : vector<16x32xf32>
    %cst_2 = arith.constant dense<0.000000e+00> : vector<16xf32>
    %8 = vector.multi_reduction <add>, %7, %cst_2 [1] : vector<16x32xf32> to vector<16xf32>
    %9 = vector.shape_cast %8 : vector<16xf32> to vector<16x1xf32>
    %cst_3 = arith.constant 3.200000e+01 : f32
    %10 = vector.broadcast %cst_3 : f32 to vector<16x1xf32>
    %11 = arith.divf %9, %10 : vector<16x1xf32>
    %cst_4 = arith.constant 9.99999996E-13 : f32
    %12 = vector.broadcast %cst_4 : f32 to vector<16x1xf32>
    %13 = arith.addf %11, %12 : vector<16x1xf32>
    %14 = math.rsqrt %13 : vector<16x1xf32>
    %15 = vector.broadcast %14 : vector<16x1xf32> to vector<16x32xf32>
    %16 = arith.mulf %6, %15 : vector<16x32xf32>
    %c0_5 = arith.constant 0 : index
    %c0_6 = arith.constant 0 : index
    %17 = vector.load %arg2[%c0_5, %c0_6] : memref<1x32xf32, #tpu.memory_space<vmem>>, vector<1x32xf32>
    %18 = vector.broadcast %17 : vector<1x32xf32> to vector<16x32xf32>
    %19 = arith.mulf %16, %18 : vector<16x32xf32>
    %c0_7 = arith.constant 0 : index
    %c0_8 = arith.constant 0 : index
    %20 = vector.load %arg3[%c0_7, %c0_8] : memref<1x32xf32, #tpu.memory_space<vmem>>, vector<1x32xf32>
    %21 = vector.broadcast %20 : vector<1x32xf32> to vector<16x32xf32>
    %22 = arith.addf %19, %21 : vector<16x32xf32>
    %c0_9 = arith.constant 0 : index
    %c0_10 = arith.constant 0 : index
    %23 = vector.load %arg4[%c0_9, %c0_10] : memref<16x32xf32, #tpu.memory_space<vmem>>, vector<16x32xf32>
    tpu.vector_store %arg4[%c0_9, %c0_10], %22 {strides = array<i32>} : memref<16x32xf32, #tpu.memory_space<vmem>>, vector<16x32xf32>,
    return
  }
  func.func @transform_0(%arg0: i32) -> (i32, i32) {
    %c0_i32 = arith.constant 0 : i32
    %c0_i32_0 = arith.constant 0 : i32
    return %arg0, %c0_i32 : i32, i32
  }
  func.func @transform_1(%arg0: i32) -> (i32, i32) {
    %c0_i32 = arith.constant 0 : i32
    %c0_i32_0 = arith.constant 0 : i32
    %c0_i32_1 = arith.constant 0 : i32
    return %c0_i32, %c0_i32_0 : i32, i32
  }
  func.func @transform_2(%arg0: i32) -> (i32, i32) {
    %c0_i32 = arith.constant 0 : i32
    %c0_i32_0 = arith.constant 0 : i32
    %c0_i32_1 = arith.constant 0 : i32
    return %c0_i32, %c0_i32_0 : i32, i32
  }
  func.func @transform_3(%arg0: i32) -> (i32, i32) {
    %c0_i32 = arith.constant 0 : i32
    %c0_i32_0 = arith.constant 0 : i32
    return %arg0, %c0_i32 : i32, i32
  }
}

</mosaic_0001>

<bundles_post_ra>
// kernel: interation_encoder_fwd.26
= control target key start
LH: loop header
LB: loop body
LE: loop exit
PB: predicated region body
PF: predicated region fallthrough
CT: control target
= control target key end

     0   :  { %8 = vsyncpa [#allocation3], 0  ;;  %s129_s15 = smov [#allocation2]   ;;  %s130_s17 = smov 128   ;;  %s182_s0 = inlined_call_operand.vmem [shape: f32[16,32], index: 0, kind: input, shape index: {}]   ;;  %s183_s1 = inlined_call_operand.hbm [shape: f32[32,32], index: 1, kind: input, shape index: {}]   ;;  %s184_s2 = inlined_call_operand.vmem [shape: f32[1,32], index: 2, kind: input, shape index: {}]   ;;  %s185_s3 = inlined_call_operand.vmem [shape: f32[16,32], index: 3, kind: output, shape index: {}]  }
   0x1   :  { %s15_s14 = sshll.u32 %s183_s1, 4  ;;  %s17_s16 = sshll.u32 %s129_s15, 4  ;;  %s16_s14 = int_to_ptr.hbm [resolvable:$true] %s15_s14  ;;  %s18_s16 = int_to_ptr.vmem [resolvable:$true] %s17_s16 }
   0x2   :  { %s131_s18 = smov 8  }
   0x3   :  { %23 = dma.hbm_to_vmem [thread:$0]  %s16_s14, 512, %s18_s16, [#allocation3], %s130_s17, %s130_s17, %s131_s18  }
   0x4   :  { %127 = dma.done.wait [#allocation3], 512  }
   0x5   :  { %128 = vsyncadd [#allocation3], 4294966784  ;;  %vm40_vm0 = vcmask 261120   ;;  %v35_v0 = vld [vmem:[#allocation2 + $0x18] sm:$0xff]  ;;  %v34_v1 = vld [vmem:[#allocation2 + $0x10] sm:$0xff] }
   0x6   :  { %89 = vmatpush.xpose.msk.msra.mxu0 %vm40_vm0, %v35_v0  ;;  %95 = vmatpush.xpose.msk.msra.mxu1 %vm40_vm0, %v35_v0  ;;  %v33_v2 = vld [vmem:[#allocation2 + $0x8] sm:$0xff]  ;;  %v32_v3 = vld [vmem:[#allocation2] sm:$0xff] }
   0x7   :  { %v30_v4 = vld [vmem:[%s182_s0] sm:$0xff]  ;;  %v31_v5 = vld [vmem:[%s182_s0 + $0x8] sm:$0xff] }
   0x8   :  { %v102_v6 = vld [vmem:[%s184_s2] ss:$0 sm:$0xff] }
   0xa   :  { %90 = vmatpush.xpose.msk.msra.mxu0 %vm40_vm0, %v34_v1  ;;  %96 = vmatpush.xpose.msk.msra.mxu1 %vm40_vm0, %v34_v1 }
   0xe   :  { %91 = vmatpush.xpose.msk.msra.mxu0 %vm40_vm0, %v33_v2  ;;  %97 = vmatpush.xpose.msk.msra.mxu1 %vm40_vm0, %v33_v2 }
  0x12   :  { %92 = vmatpush.xpose.msk.msra.mxu0 %vm40_vm0, %v32_v3  ;;  %98 = vmatpush.xpose.msk.msra.mxu1 %vm40_vm0, %v32_v3 }
  0x15   :  { %93 = vmatmul.msk.f32.vlgmr.msra.gmra.mxu0 %vm40_vm0, %v30_v4  ;;  %94 = vmatmul.msk.f32.vlgmr.msra.gmra.mxu1 %vm40_vm0, %v31_v5 }
  0x92   :  { %v76_v7 = vpop.f32.mrf.mxu0  ;;  %v79_v8 = vpop.f32.mrf.mxu1 }
  0x93   :  { %v77_v9 = vadd.f32 %v102_v6, %v76_v7  ;;  %v80_v10 = vadd.f32 %v102_v6, %v79_v8 }
  0x95   :  { %82 = vst.msk [vmem:[%s185_s3] sm:$0xff] %vm40_vm0, %v77_v9 }
  0x96   :  { %83 = vst.msk [vmem:[%s185_s3 + $0x8] sm:$0xff] %vm40_vm0, %v80_v10 }
  0x97   :  { %88 = vsyncpa [#allocation3], 1 }

// kernel: interation_encoder_fwd.24
= control target key start
LH: loop header
LB: loop body
LE: loop exit
PB: predicated region body
PF: predicated region fallthrough
CT: control target
= control target key end

     0   :  { %vm24_vm0 = vcmask 261120   ;;  %s142_s1 = inlined_call_operand.vmem [shape: f32[32,32], index: 1, kind: input, shape index: {}]   ;;  %s143_s2 = inlined_call_operand.vmem [shape: f32[1,32], index: 2, kind: input, shape index: {}]   ;;  %s144_s0 = inlined_call_operand.vmem [shape: f32[16,32], index: 0, kind: input, shape index: {}]   ;;  %s145_s3 = inlined_call_operand.vmem [shape: f32[16,32], index: 3, kind: output, shape index: {}]  }
   0x1   :  { %v19_v0 = vld [vmem:[%s142_s1 + $0x18] sm:$0xff]  ;;  %v18_v1 = vld [vmem:[%s142_s1 + $0x10] sm:$0xff]  ;;  %v17_v2 = vld [vmem:[%s142_s1 + $0x8] sm:$0xff] }
   0x2   :  { %72 = vmatpush.xpose.msk.msra.mxu0 %vm24_vm0, %v19_v0  ;;  %78 = vmatpush.xpose.msk.msra.mxu1 %vm24_vm0, %v19_v0  ;;  %v16_v3 = vld [vmem:[%s142_s1] sm:$0xff]  ;;  %v15_v5 = vld [vmem:[%s144_s0 + $0x8] sm:$0xff] }
   0x3   :  { %v14_v4 = vld [vmem:[%s144_s0] sm:$0xff] }
   0x4   :  { %v82_v6 = vld [vmem:[%s143_s2] ss:$0 sm:$0xff] }
   0x6   :  { %73 = vmatpush.xpose.msk.msra.mxu0 %vm24_vm0, %v18_v1  ;;  %79 = vmatpush.xpose.msk.msra.mxu1 %vm24_vm0, %v18_v1 }
   0xa   :  { %74 = vmatpush.xpose.msk.msra.mxu0 %vm24_vm0, %v17_v2  ;;  %80 = vmatpush.xpose.msk.msra.mxu1 %vm24_vm0, %v17_v2 }
   0xe   :  { %75 = vmatpush.xpose.msk.msra.mxu0 %vm24_vm0, %v16_v3  ;;  %81 = vmatpush.xpose.msk.msra.mxu1 %vm24_vm0, %v16_v3 }
  0x11   :  { %76 = vmatmul.msk.f32.vlgmr.msra.gmra.mxu0 %vm24_vm0, %v14_v4  ;;  %77 = vmatmul.msk.f32.vlgmr.msra.gmra.mxu1 %vm24_vm0, %v15_v5 }
  0x8e   :  { %v60_v7 = vpop.f32.mrf.mxu0  ;;  %v63_v8 = vpop.f32.mrf.mxu1 }
  0x8f   :  { %v61_v9 = vadd.f32 %v82_v6, %v60_v7  ;;  %v64_v10 = vadd.f32 %v82_v6, %v63_v8 }
  0x91   :  { %66 = vst.msk [vmem:[%s145_s3] sm:$0xff] %vm24_vm0, %v61_v9 }
  0x92   :  { %67 = vst.msk [vmem:[%s145_s3 + $0x8] sm:$0xff] %vm24_vm0, %v64_v10 }

// kernel: interation_encoder_fwd.27
= control target key start
LH: loop header
LB: loop body
LE: loop exit
PB: predicated region body
PF: predicated region fallthrough
CT: control target
= control target key end

     0   :  { %s427_s12 = smov 0   ;;  %s465_s0 = inlined_call_operand.vmem [shape: f32[8,8,8], index: 0, kind: input, shape index: {}]   ;;  %s466_s1 = inlined_call_operand.vmem [shape: f32[8,16,8], index: 1, kind: input, shape index: {}]   ;;  %s467_s2 = inlined_call_operand.vmem [shape: f32[8,16,8], index: 2, kind: input, shape index: {}]   ;;  %s468_s3 = inlined_call_operand.vmem [shape: f32[8,8,8], index: 3, kind: output, shape index: {}]  }
   0x1 LB: > { %s368_s13 = sadd.s32 4294967295, %s405_s12   ;;  %p372_p0 = scmp.ge.s32.totalorder %s405_s12, 1  ;;  %s405_s12 = sphi %s427_s12, %s13_s12  }
   0x2   : > { %p156_p1 = scmp.lt.s32.totalorder %s405_s12, 9 }
   0x4   : > { %p157_p2 = pnand %p372_p0, %p156_p1 }
   0x5   : > { %p188_p3 = scmp.lt.s32.totalorder (!%p157_p2), %s368_s13, 7 }
   0x6   : > { %160 = sbr.rel (%p157_p2) target bundleno = 541 (0x21d), region = 32 }
   0xb   : > { %s470_s13 = smov (!%p188_p3, %s368_s13), 7  ;;  %vm211_vm0 = vcmask 64512   ;;  %vm242_vm1 = vcmask 130048  }
   0xc   : > { %s385_s14 = sshll.u32 %s470_s13, 4  ;;  %s373_s18 = sshll.u32 %s470_s13, 3 }
   0xd   : > { %s196_s17 = scalar_lea.vmem %s466_s1, %s385_s14  ;;  %s191_s21 = scalar_lea.vmem %s465_s0, %s373_s18 }
   0xe   : > { %v208_v0 = vld [vmem:[%s196_s17 + $0x8] sm:$0xff]  ;;  %v207_v1 = vld [vmem:[%s196_s17] sm:$0xff]  ;;  %s201_s24 = scalar_lea.vmem %s467_s2, %s385_s14  ;;  %s205_s27 = scalar_lea.vmem %s468_s3, %s373_s18 }
   0xf   : > { %379 = vmatpush.xpose.msk.msra.mxu0 %vm211_vm0, %v208_v0  ;;  %v206_v2 = vld [vmem:[%s191_s21] sm:$0xff]  ;;  %v210_v11 = vld [vmem:[%s201_s24 + $0x8] sm:$0xff] }
  0x10   : > { %v209_v12 = vld [vmem:[%s201_s24] sm:$0xff]  ;;  %284 = vmatpush.msra.mxu1 %v210_v11 }
  0x12   : > { %285 = vmatpush.msra.mxu1 %v209_v12 }
  0x13   : > { %380 = vmatpush.xpose.msk.msra.mxu0 %vm211_vm0, %v207_v1 }
  0x16   : > { %381 = vmatmul.msk.f32.vlgmr.msra.gmra.mxu0 %vm211_vm0, %v206_v2 }
  0x93   : > { %v238_v3 = vpop.f32.mrf.mxu0 }
  0x94   : > { %v241_v4 = vmul.f32 0.35355338, %v238_v3 }
  0x96   : > { %v243_v5 = vsel %vm242_vm1, %v241_v4, -inf }
  0x97   : > { %244 = vmax.xlane.f32.xlu0 %v243_v5 }
 0x10a   : > { %v245_v6 = vpop.xlane.xlu0 %244 }
 0x10b   : > { %v246_v7 = vsub.f32 %v241_v4, %v245_v6 }
 0x10d   : > { %v247_v8 = vmul.f32 1.442695, %v246_v7 }
 0x10f   : > { %395 = vpow2.f32 %v247_v8 }
 0x115   : > { %v396_v9 = vpop.eup %395 }
 0x116   : > { %v249_v10 = vsel %vm242_vm1, %v396_v9, 0.0 }
 0x117   : > { %250 = vadd.xlane.f32.xlu0 %v249_v10 }
 0x18a   : > { %v251_v13 = vpop.xlane.xlu0 %250 }
 0x18b   : > { %397 = vrcp.f32 %v251_v13  ;;  %v263_v17 = vand.u32 2147483648, %v251_v13  ;;  %v261_v19 = vand.u32 2147483647, %v251_v13  ;;  %vm257_vm3 = vweird.f32 %v251_v13 }
 0x18d   : > { %v264_v21 = vor.u32 1.1754944e-38, %v263_v17  ;;  %vm262_vm5 = vcmp.eq.f32.partialorder %v261_v19, 8.507059e+37 }
 0x191   : > { %v398_v14 = vpop.eup %397 }
 0x192   : > { %v253_v15 = vmul.f32 %v398_v14, %v251_v13  ;;  %vm258_vm2 = vweird.f32 %v398_v14 }
 0x193   : > { %vm259_vm4 = vmor %vm257_vm3, %vm258_vm2 }
 0x194   : > { %v254_v16 = vsub.f32 1.0, %v253_v15 }
 0x196   : > { %v255_v18 = vmul.f32 %v398_v14, %v254_v16 }
 0x198   : > { %v256_v20 = vadd.f32 %v398_v14, %v255_v18 }
 0x19a   : > { %v260_v22 = vsel %vm259_vm4, %v398_v14, %v256_v20 }
 0x19b   : > { %v265_v23 = vsel %vm262_vm5, %v264_v21, %v260_v22 }
 0x19c   : > { %v266_v24 = vmul.f32 %v396_v9, %v265_v23 }
 0x19e   : > { %382 = vmatmul.msk.f32.vlgmr.msra.gmra.mxu1 %vm242_vm1, %v266_v24 }
 0x21b   : > { %v287_v25 = vpop.f32.mrf.mxu1 }
 0x21c   : > { %290 = vst.msk [vmem:[%s205_s27] sm:$0xff] %vm211_vm0, %v287_v25 }
 0x21d PF: > { %s13_s12 = sadd.s32 1, %s405_s12  }
 0x21e   : > { %p10_p4 = scmp.ge.s32.totalorder %s13_s12, 10  }
 0x220   :  { %12 = sbr.rel (!%p10_p4) target bundleno = 1 (0x1), region = 68 }

// kernel: interation_encoder_fwd.29
= control target key start
LH: loop header
LB: loop body
LE: loop exit
PB: predicated region body
PF: predicated region fallthrough
CT: control target
= control target key end

     0   :  { %vm16_vm0 = vcmask 261120   ;;  %v95_v4 = vmov 32.0   ;;  %s140_s0 = inlined_call_operand.vmem [shape: f32[16,32], index: 0, kind: input, shape index: {}]   ;;  %s141_s1 = inlined_call_operand.vmem [shape: f32[1,32], index: 1, kind: input, shape index: {}]   ;;  %s142_s2 = inlined_call_operand.vmem [shape: f32[1,32], index: 2, kind: input, shape index: {}]   ;;  %s143_s3 = inlined_call_operand.vmem [shape: f32[16,32], index: 3, kind: output, shape index: {}]  }
   0x1   :  { %v14_v0 = vld [vmem:[%s140_s0] sm:$0xff]  ;;  %v15_v2 = vld [vmem:[%s140_s0 + $0x8] sm:$0xff]  ;;  %89 = vrcp.f32 %v95_v4 }
   0x2   :  { %v17_v1 = vsel %vm16_vm0, %v14_v0, 0.0  ;;  %v20_v3 = vsel %vm16_vm0, %v15_v2, 0.0  ;;  %v87_v35 = vld [vmem:[%s141_s1] ss:$0 sm:$0xff] }
   0x3   :  { %18 = vadd.xlane.f32.xlu0 %v17_v1  ;;  %v88_v38 = vld [vmem:[%s142_s2] ss:$0 sm:$0xff] }
   0x7   :  { %v90_v5 = vpop.eup %89 }
   0x8   :  { %v24_v6 = vmul.f32 32.0, %v90_v5  ;;  %vm28_vm1 = vweird.f32 %v90_v5 }
   0xa   :  { %v25_v7 = vsub.f32 1.0, %v24_v6 }
   0xb   :  { %21 = vadd.xlane.f32.xlu0 %v20_v3 }
   0xc   :  { %v26_v8 = vmul.f32 %v90_v5, %v25_v7 }
   0xe   :  { %v27_v9 = vadd.f32 %v90_v5, %v26_v8 }
  0x10   :  { %v29_v10 = vsel %vm28_vm1, %v90_v5, %v27_v9 }
  0x76   :  { %v19_v11 = vpop.xlane.xlu0 %18 }
  0x77   :  { %v30_v12 = vmul.f32 %v29_v10, %v19_v11 }
  0x79   :  { %v32_v13 = vsub.f32 %v14_v0, %v30_v12 }
  0x7b   :  { %v34_v14 = vmul.f32 %v32_v13, %v32_v13 }
  0x7d   :  { %v36_v15 = vsel %vm16_vm0, %v34_v14, 0.0 }
  0x7e   :  { %37 = vadd.xlane.f32.xlu1 %v36_v15  ;;  %v22_v16 = vpop.xlane.xlu0 %21 }
  0x7f   :  { %v31_v17 = vmul.f32 %v29_v10, %v22_v16 }
  0x81   :  { %v33_v18 = vsub.f32 %v15_v2, %v31_v17 }
  0x83   :  { %v35_v19 = vmul.f32 %v33_v18, %v33_v18 }
  0x85   :  { %v39_v20 = vsel %vm16_vm0, %v35_v19, 0.0 }
  0x86   :  { %40 = vadd.xlane.f32.xlu1 %v39_v20 }
  0xf1   :  { %v38_v21 = vpop.xlane.xlu1 %37 }
  0xf2   :  { %v42_v22 = vmul.f32 %v38_v21, %v29_v10 }
  0xf4   :  { %v44_v23 = vadd.f32 1e-12, %v42_v22 }
  0xf6   :  { %91 = vrsqrt.f32 %v44_v23  ;;  %vm52_vm3 = vweird.f32 %v44_v23 }
  0xf9   :  { %v41_v24 = vpop.xlane.xlu1 %40 }
  0xfa   :  { %v43_v25 = vmul.f32 %v41_v24, %v29_v10 }
  0xfc   :  { %v92_v26 = vpop.eup %91  ;;  %v45_v27 = vadd.f32 1e-12, %v43_v25 }
  0xfd   :  { %v47_v28 = vmul.f32 %v92_v26, %v44_v23  ;;  %vm53_vm2 = vweird.f32 %v92_v26 }
  0xfe   :  { %93 = vrsqrt.f32 %v45_v27  ;;  %vm54_vm4 = vmor %vm52_vm3, %vm53_vm2  ;;  %vm62_vm6 = vweird.f32 %v45_v27 }
  0xff   :  { %v48_v29 = vmul.f32 %v92_v26, %v47_v28 }
 0x101   :  { %v49_v30 = vmul.f32 0.5, %v48_v29 }
 0x103   :  { %v50_v31 = vsub.f32 1.5, %v49_v30 }
 0x104   :  { %v94_v32 = vpop.eup %93 }
 0x105   :  { %v51_v33 = vmul.f32 %v92_v26, %v50_v31  ;;  %v57_v34 = vmul.f32 %v94_v32, %v45_v27  ;;  %vm63_vm5 = vweird.f32 %v94_v32 }
 0x106   :  { %vm64_vm7 = vmor %vm62_vm6, %vm63_vm5 }
 0x107   :  { %v55_v36 = vsel %vm54_vm4, %v92_v26, %v51_v33  ;;  %v58_v37 = vmul.f32 %v94_v32, %v57_v34 }
 0x108   :  { %v66_v39 = vmul.f32 %v55_v36, %v32_v13 }
 0x109   :  { %v59_v40 = vmul.f32 0.5, %v58_v37 }
 0x10a   :  { %v72_v41 = vmul.f32 %v87_v35, %v66_v39 }
 0x10b   :  { %v60_v42 = vsub.f32 1.5, %v59_v40 }
 0x10c   :  { %v78_v43 = vadd.f32 %v88_v38, %v72_v41 }
 0x10d   :  { %v61_v44 = vmul.f32 %v94_v32, %v60_v42 }
 0x10e   :  { %80 = vst.msk [vmem:[%s143_s3] sm:$0xff] %vm16_vm0, %v78_v43 }
 0x10f   :  { %v65_v45 = vsel %vm64_vm7, %v94_v32, %v61_v44 }
 0x110   :  { %v67_v46 = vmul.f32 %v65_v45, %v33_v18 }
 0x112   :  { %v73_v47 = vmul.f32 %v87_v35, %v67_v46 }
 0x114   :  { %v79_v48 = vadd.f32 %v88_v38, %v73_v47 }
 0x116   :  { %81 = vst.msk [vmem:[%s143_s3 + $0x8] sm:$0xff] %vm16_vm0, %v79_v48 }

// kernel: interation_encoder_fwd.31
= control target key start
LH: loop header
LB: loop body
LE: loop exit
PB: predicated region body
PF: predicated region fallthrough
CT: control target
= control target key end

     0   :  { %vm24_vm0 = vcmask 523264   ;;  %vm66_vm1 = vcmask 261120   ;;  %s141_s1 = inlined_call_operand.vmem [shape: f32[32,64], index: 1, kind: input, shape index: {}]   ;;  %s142_s2 = inlined_call_operand.vmem [shape: f32[1,32], index: 2, kind: input, shape index: {}]   ;;  %s143_s0 = inlined_call_operand.vmem [shape: f32[16,64], index: 0, kind: input, shape index: {}]   ;;  %s144_s3 = inlined_call_operand.vmem [shape: f32[16,32], index: 3, kind: output, shape index: {}]  }
   0x1   :  { %v19_v0 = vld [vmem:[%s141_s1 + $0x18] sm:$0xff]  ;;  %v18_v1 = vld [vmem:[%s141_s1 + $0x10] sm:$0xff]  ;;  %v17_v2 = vld [vmem:[%s141_s1 + $0x8] sm:$0xff] }
   0x2   :  { %73 = vmatpush.xpose.msk.msra.mxu0 %vm24_vm0, %v19_v0  ;;  %79 = vmatpush.xpose.msk.msra.mxu1 %vm24_vm0, %v19_v0  ;;  %v16_v3 = vld [vmem:[%s141_s1] sm:$0xff]  ;;  %v15_v5 = vld [vmem:[%s143_s0 + $0x8] sm:$0xff] }
   0x3   :  { %v14_v4 = vld [vmem:[%s143_s0] sm:$0xff] }
   0x4   :  { %v83_v6 = vld [vmem:[%s142_s2] ss:$0 sm:$0xff] }
   0x6   :  { %74 = vmatpush.xpose.msk.msra.mxu0 %vm24_vm0, %v18_v1  ;;  %80 = vmatpush.xpose.msk.msra.mxu1 %vm24_vm0, %v18_v1 }
   0xa   :  { %75 = vmatpush.xpose.msk.msra.mxu0 %vm24_vm0, %v17_v2  ;;  %81 = vmatpush.xpose.msk.msra.mxu1 %vm24_vm0, %v17_v2 }
   0xe   :  { %76 = vmatpush.xpose.msk.msra.mxu0 %vm24_vm0, %v16_v3  ;;  %82 = vmatpush.xpose.msk.msra.mxu1 %vm24_vm0, %v16_v3 }
  0x11   :  { %77 = vmatmul.msk.f32.vlgmr.msra.gmra.mxu0 %vm24_vm0, %v14_v4  ;;  %78 = vmatmul.msk.f32.vlgmr.msra.gmra.mxu1 %vm24_vm0, %v15_v5 }
  0x8e   :  { %v60_v7 = vpop.f32.mrf.mxu0  ;;  %v63_v8 = vpop.f32.mrf.mxu1 }
  0x8f   :  { %v61_v9 = vadd.f32 %v83_v6, %v60_v7  ;;  %v64_v10 = vadd.f32 %v83_v6, %v63_v8 }
  0x91   :  { %67 = vst.msk [vmem:[%s144_s3] sm:$0xff] %vm66_vm1, %v61_v9 }
  0x92   :  { %68 = vst.msk [vmem:[%s144_s3 + $0x8] sm:$0xff] %vm66_vm1, %v64_v10 }

// kernel: interation_encoder_fwd.30
= control target key start
LH: loop header
LB: loop body
LE: loop exit
PB: predicated region body
PF: predicated region fallthrough
CT: control target
= control target key end

     0   :  { %vm28_vm0 = vcmask 261120   ;;  %vm100_vm1 = vcmask 523264   ;;  %s207_s1 = inlined_call_operand.vmem [shape: f32[64,32], index: 1, kind: input, shape index: {}]   ;;  %s208_s2 = inlined_call_operand.vmem [shape: f32[1,64], index: 2, kind: input, shape index: {}]   ;;  %s209_s0 = inlined_call_operand.vmem [shape: f32[16,32], index: 0, kind: input, shape index: {}]   ;;  %s210_s3 = inlined_call_operand.vmem [shape: f32[16,64], index: 3, kind: output, shape index: {}]  }
   0x1   :  { %v23_v0 = vld [vmem:[%s207_s1 + $0x38] sm:$0xff]  ;;  %v22_v1 = vld [vmem:[%s207_s1 + $0x30] sm:$0xff]  ;;  %v21_v2 = vld [vmem:[%s207_s1 + $0x28] sm:$0xff] }
   0x2   :  { %107 = vmatpush.xpose.msk.msra.mxu0 %vm28_vm0, %v23_v0  ;;  %117 = vmatpush.xpose.msk.msra.mxu1 %vm28_vm0, %v23_v0  ;;  %v20_v3 = vld [vmem:[%s207_s1 + $0x20] sm:$0xff]  ;;  %v19_v4 = vld [vmem:[%s207_s1 + $0x18] sm:$0xff]  ;;  %v18_v5 = vld [vmem:[%s207_s1 + $0x10] sm:$0xff] }
   0x3   :  { %v17_v6 = vld [vmem:[%s207_s1 + $0x8] sm:$0xff]  ;;  %v16_v7 = vld [vmem:[%s207_s1] sm:$0xff] }
   0x4   :  { %v14_v8 = vld [vmem:[%s209_s0] sm:$0xff]  ;;  %v15_v9 = vld [vmem:[%s209_s0 + $0x8] sm:$0xff] }
   0x5   :  { %v125_v10 = vld [vmem:[%s208_s2] ss:$0 sm:$0xff] }
   0x6   :  { %108 = vmatpush.xpose.msk.msra.mxu0 %vm28_vm0, %v22_v1  ;;  %118 = vmatpush.xpose.msk.msra.mxu1 %vm28_vm0, %v22_v1 }
   0xa   :  { %109 = vmatpush.xpose.msk.msra.mxu0 %vm28_vm0, %v21_v2  ;;  %119 = vmatpush.xpose.msk.msra.mxu1 %vm28_vm0, %v21_v2 }
   0xe   :  { %110 = vmatpush.xpose.msk.msra.mxu0 %vm28_vm0, %v20_v3  ;;  %120 = vmatpush.xpose.msk.msra.mxu1 %vm28_vm0, %v20_v3 }
  0x12   :  { %111 = vmatpush.xpose.msk.msra.mxu0 %vm28_vm0, %v19_v4  ;;  %121 = vmatpush.xpose.msk.msra.mxu1 %vm28_vm0, %v19_v4 }
  0x16   :  { %112 = vmatpush.xpose.msk.msra.mxu0 %vm28_vm0, %v18_v5  ;;  %122 = vmatpush.xpose.msk.msra.mxu1 %vm28_vm0, %v18_v5 }
  0x1a   :  { %113 = vmatpush.xpose.msk.msra.mxu0 %vm28_vm0, %v17_v6  ;;  %123 = vmatpush.xpose.msk.msra.mxu1 %vm28_vm0, %v17_v6 }
  0x1e   :  { %114 = vmatpush.xpose.msk.msra.mxu0 %vm28_vm0, %v16_v7  ;;  %124 = vmatpush.xpose.msk.msra.mxu1 %vm28_vm0, %v16_v7 }
  0x21   :  { %115 = vmatmul.msk.f32.vlgmr.msra.gmra.mxu0 %vm28_vm0, %v14_v8  ;;  %116 = vmatmul.msk.f32.vlgmr.msra.gmra.mxu1 %vm28_vm0, %v15_v9 }
  0x9e   :  { %v76_v11 = vpop.f32.mrf.mxu0  ;;  %v79_v12 = vpop.f32.mrf.mxu1 }
  0x9f   :  { %v77_v13 = vadd.f32 %v125_v10, %v76_v11  ;;  %v80_v14 = vadd.f32 %v125_v10, %v79_v12 }
  0xa1   :  { %v84_v15 = vmul.f32 0.044715, %v77_v13  ;;  %v85_v16 = vmul.f32 0.044715, %v80_v14  ;;  %v82_v27 = vmul.f32 0.5, %v77_v13  ;;  %v83_v29 = vmul.f32 0.5, %v80_v14 }
  0xa3   :  { %v86_v17 = vmul.f32 %v84_v15, %v77_v13  ;;  %v87_v18 = vmul.f32 %v85_v16, %v80_v14 }
  0xa5   :  { %v88_v19 = vmul.f32 %v86_v17, %v77_v13  ;;  %v89_v20 = vmul.f32 %v87_v18, %v80_v14 }
  0xa7   :  { %v90_v21 = vadd.f32 %v88_v19, %v77_v13  ;;  %v91_v22 = vadd.f32 %v89_v20, %v80_v14 }
  0xa9   :  { %v92_v23 = vmul.f32 0.7978846, %v90_v21  ;;  %v93_v24 = vmul.f32 0.7978846, %v91_v22 }
  0xab   :  { %126 = vtanh.f32 %v92_v23 }
  0xac   :  { %128 = vtanh.f32 %v93_v24 }
  0xb1   :  { %v127_v25 = vpop.eup %126 }
  0xb2   :  { %v129_v26 = vpop.eup %128  ;;  %v96_v28 = vadd.f32 1.0, %v127_v25 }
  0xb3   :  { %v97_v30 = vadd.f32 1.0, %v129_v26 }
  0xb4   :  { %v98_v31 = vmul.f32 %v96_v28, %v82_v27 }
  0xb5   :  { %v99_v32 = vmul.f32 %v97_v30, %v83_v29 }
  0xb6   :  { %101 = vst.msk [vmem:[%s210_s3] sm:$0xff] %vm100_vm1, %v98_v31 }
  0xb7   :  { %102 = vst.msk [vmem:[%s210_s3 + $0x8] sm:$0xff] %vm100_vm1, %v99_v32 }

// kernel: interation_encoder_fwd.43
= control target key start
LH: loop header
LB: loop body
LE: loop exit
PB: predicated region body
PF: predicated region fallthrough
CT: control target
= control target key end

     0   :  { %vm17_vm0 = vcmask 261120   ;;  %s184_s0 = inlined_call_operand.vmem [shape: f32[16,32], index: 0, kind: input, shape index: {}]   ;;  %s185_s1 = inlined_call_operand.vmem [shape: f32[1,32], index: 1, kind: input, shape index: {}]   ;;  %s186_s2 = inlined_call_operand.vmem [shape: f32[1,32], index: 2, kind: input, shape index: {}]   ;;  %s187_s3 = inlined_call_operand.hbm [shape: f32[16,32], index: 3, kind: output, shape index: {}]  }
   0x1   :  { %v15_v0 = vld [vmem:[%s184_s0] sm:$0xff] }
   0x2   :  { %v18_v1 = vsel %vm17_vm0, %v15_v0, 0.0 }
   0x3   :  { %8 = vsyncpa [#allocation3], 0  ;;  %19 = vadd.xlane.f32.xlu0 %v18_v1  ;;  %v16_v2 = vld [vmem:[%s184_s0 + $0x8] sm:$0xff]  ;;  %v139_v4 = vmov 32.0   ;;  %v105_v35 = vld [vmem:[%s185_s1] ss:$0 sm:$0xff] }
   0x4   :  { %v21_v3 = vsel %vm17_vm0, %v16_v2, 0.0  ;;  %107 = vrcp.f32 %v139_v4  ;;  %v106_v39 = vld [vmem:[%s186_s2] ss:$0 sm:$0xff]  ;;  %s140_s1 = smov [#allocation2]   ;;  %s89_s22 = sshll.u32 %s187_s3, 4  ;;  %s90_s22 = int_to_ptr.hbm [resolvable:$true] %s89_s22 }
   0x5   :  { %s87_s19 = sshll.u32 %s140_s1, 4  ;;  %s141_s2 = smov 128   ;;  %s88_s19 = int_to_ptr.vmem [resolvable:$true] %s87_s19 }
   0x6   :  { %s142_s23 = smov 8  }
   0xa   :  { %v108_v5 = vpop.eup %107 }
   0xb   :  { %22 = vadd.xlane.f32.xlu0 %v21_v3  ;;  %v25_v6 = vmul.f32 32.0, %v108_v5  ;;  %vm29_vm1 = vweird.f32 %v108_v5 }
   0xd   :  { %v26_v7 = vsub.f32 1.0, %v25_v6 }
   0xf   :  { %v27_v8 = vmul.f32 %v108_v5, %v26_v7 }
  0x11   :  { %v28_v9 = vadd.f32 %v108_v5, %v27_v8 }
  0x13   :  { %v30_v10 = vsel %vm29_vm1, %v108_v5, %v28_v9 }
  0x76   :  { %v20_v11 = vpop.xlane.xlu0 %19 }
  0x77   :  { %v31_v12 = vmul.f32 %v30_v10, %v20_v11 }
  0x79   :  { %v33_v13 = vsub.f32 %v15_v0, %v31_v12 }
  0x7b   :  { %v35_v14 = vmul.f32 %v33_v13, %v33_v13 }
  0x7d   :  { %v37_v15 = vsel %vm17_vm0, %v35_v14, 0.0 }
  0x7e   :  { %38 = vadd.xlane.f32.xlu1 %v37_v15  ;;  %v23_v16 = vpop.xlane.xlu0 %22 }
  0x7f   :  { %v32_v17 = vmul.f32 %v30_v10, %v23_v16 }
  0x81   :  { %v34_v18 = vsub.f32 %v16_v2, %v32_v17 }
  0x83   :  { %v36_v19 = vmul.f32 %v34_v18, %v34_v18 }
  0x85   :  { %v40_v20 = vsel %vm17_vm0, %v36_v19, 0.0 }
  0x86   :  { %41 = vadd.xlane.f32.xlu1 %v40_v20 }
  0xf1   :  { %v39_v21 = vpop.xlane.xlu1 %38 }
  0xf2   :  { %v43_v22 = vmul.f32 %v39_v21, %v30_v10 }
  0xf4   :  { %v45_v23 = vadd.f32 1e-12, %v43_v22 }
  0xf6   :  { %109 = vrsqrt.f32 %v45_v23  ;;  %vm53_vm3 = vweird.f32 %v45_v23 }
  0xf9   :  { %v42_v24 = vpop.xlane.xlu1 %41 }
  0xfa   :  { %v44_v25 = vmul.f32 %v42_v24, %v30_v10 }
  0xfc   :  { %v110_v26 = vpop.eup %109  ;;  %v46_v27 = vadd.f32 1e-12, %v44_v25 }
  0xfd   :  { %v48_v28 = vmul.f32 %v110_v26, %v45_v23  ;;  %vm54_vm2 = vweird.f32 %v110_v26 }
  0xfe   :  { %111 = vrsqrt.f32 %v46_v27  ;;  %vm55_vm4 = vmor %vm53_vm3, %vm54_vm2  ;;  %vm63_vm6 = vweird.f32 %v46_v27 }
  0xff   :  { %v49_v29 = vmul.f32 %v110_v26, %v48_v28 }
 0x101   :  { %v50_v30 = vmul.f32 0.5, %v49_v29 }
 0x103   :  { %v51_v31 = vsub.f32 1.5, %v50_v30 }
 0x104   :  { %v112_v32 = vpop.eup %111 }
 0x105   :  { %v52_v33 = vmul.f32 %v110_v26, %v51_v31  ;;  %v58_v34 = vmul.f32 %v112_v32, %v46_v27  ;;  %vm64_vm5 = vweird.f32 %v112_v32 }
 0x106   :  { %vm65_vm7 = vmor %vm63_vm6, %vm64_vm5 }
 0x107   :  { %v56_v36 = vsel %vm55_vm4, %v110_v26, %v52_v33  ;;  %v59_v37 = vmul.f32 %v112_v32, %v58_v34 }
 0x108   :  { %v67_v38 = vmul.f32 %v56_v36, %v33_v13 }
 0x109   :  { %v60_v40 = vmul.f32 0.5, %v59_v37 }
 0x10a   :  { %v73_v41 = vmul.f32 %v105_v35, %v67_v38 }
 0x10b   :  { %v61_v42 = vsub.f32 1.5, %v60_v40 }
 0x10c   :  { %v79_v43 = vadd.f32 %v106_v39, %v73_v41 }
 0x10d   :  { %v62_v44 = vmul.f32 %v112_v32, %v61_v42 }
 0x10e   :  { %81 = vst.msk [vmem:[#allocation2] sm:$0xff] %vm17_vm0, %v79_v43 }
 0x10f   :  { %v66_v45 = vsel %vm65_vm7, %v112_v32, %v62_v44 }
 0x110   :  { %v68_v46 = vmul.f32 %v66_v45, %v34_v18 }
 0x112   :  { %v74_v47 = vmul.f32 %v105_v35, %v68_v46 }
 0x114   :  { %v80_v48 = vadd.f32 %v106_v39, %v74_v47 }
 0x116   :  { %82 = vst.msk [vmem:[#allocation2 + $0x8] sm:$0xff] %vm17_vm0, %v80_v48 }
 0x117   :  { %95 = dma.vmem_to_hbm [thread:$0]  %s88_s19, 256, %s90_s22, [#allocation3], %s141_s2, %s141_s2, %s142_s23  }
 0x118   :  { %137 = dma.done.wait [#allocation3], 256  }
 0x119   :  { %138 = vsyncadd [#allocation3], 4294967040 }
 0x11a   :  { %100 = vsyncpa [#allocation3], 1 }

</bundles_post_ra>
